<compile_context>
chip_gen: v5e
topology: v5e:2x2
jax: 0.10.0
libtpu: 0.0.40
codegen_flags: <defaults>
</compile_context>

<pallas_src>
from functools import partial

import jax
import jax.numpy as jnp
from jax.experimental import pallas as pl
from jax.experimental.pallas import tpu as pltpu

# Fixed network geometry (from the PyTorch module) and packed-parameter layout.
D_IN, D_HID, D_OUT = 8, 15, 4
P_ROWS, P_COLS = 24, 128
ROW_W1T = 0          # rows 0..14 , cols 0..7  : W1^T  [15, 8]
COL_B1 = D_IN        # rows 0..14 , col  8     : b1    [15]
ROW_W2T = 16         # rows 16..19, cols 0..14 : W2^T  [4, 15]
COL_B2 = D_HID       # rows 16..19, col  15    : b2    [4]

MAX_TILE = 65536     # keeps double-buffered I/O + f32 temps well under 32 MiB VMEM


def _round_up(x, m):
    return ((x + m - 1) // m) * m


def _choose_tile(batch, block_b):
    # Lane-dim tile must be a multiple of 128; cap so VMEM stays bounded, and keep
    # >=4 grid steps on large batches (v7x megacore + pipeline overlap).
    block_b = max(128, _round_up(min(block_b, MAX_TILE), 128))
    quarter = _round_up(pl.cdiv(batch, 4), 128)
    return min(block_b, max(quarter, 128))


def pack_params(w1, b1, w2, b2):
    """Pack w1[8,15], b1[15], w2[15,4], b2[4] into one resident (24,128) f32 slab.

    Weights are stored transposed so the kernel's lane-dense (transposed) matmuls
    can slice them directly.  Call this ONCE when parameters change.
    """
    p = jnp.zeros((P_ROWS, P_COLS), jnp.float32)
    p = p.at[ROW_W1T:ROW_W1T + D_HID, 0:D_IN].set(w1.T.astype(jnp.float32))
    p = p.at[ROW_W1T:ROW_W1T + D_HID, COL_B1].set(b1.astype(jnp.float32))
    p = p.at[ROW_W2T:ROW_W2T + D_OUT, 0:D_HID].set(w2.T.astype(jnp.float32))
    p = p.at[ROW_W2T:ROW_W2T + D_OUT, COL_B2].set(b2.astype(jnp.float32))
    return p


def mlp_kernel(xt_ref, p_ref, ot_ref):
    # xt_ref: [8, TB]   (batch on the lane axis -> lane-dense everywhere)
    # p_ref : [24, 128] constant-index block, DMA'd once, VMEM-resident
    # ot_ref: [4, TB]   lane-dense output block (unmasked stores)
    xt = xt_ref[...]                                            # [8, TB]
    w1t = p_ref[ROW_W1T:ROW_W1T + D_HID, 0:D_IN]                # [15, 8]
    b1 = p_ref[ROW_W1T:ROW_W1T + D_HID, COL_B1:COL_B1 + 1]      # [15, 1]
    w2t = p_ref[ROW_W2T:ROW_W2T + D_OUT, 0:D_HID]               # [4, 15]
    b2 = p_ref[ROW_W2T:ROW_W2T + D_OUT, COL_B2:COL_B2 + 1]      # [4, 1]

    h = jnp.tanh(jnp.dot(w1t, xt, preferred_element_type=jnp.float32) + b1)  # [15, TB]
    z = jnp.dot(w2t, h, preferred_element_type=jnp.float32) + b2             # [4, TB]
    ot_ref[...] = jax.nn.sigmoid(z)


@partial(jax.jit, static_argnames=("block_b",))
def simple_model_forward(x, packed_params, *, block_b=32768):
    """x: [B, 8] float32; packed_params: (24,128) slab from pack_params()."""
    B = x.shape[0]
    x = x.astype(jnp.float32)

    TB = _choose_tile(B, block_b)
    B_pad = _round_up(B, TB)
    if B_pad != B:
        x = jnp.pad(x, ((0, B_pad - B), (0, 0)))     # padded rows discarded below
    xt = x.T                                          # [8, B_pad] -- layout plumbing (32 B/row)

    grid = (B_pad // TB,)

    out_t = pl.pallas_call(
        mlp_kernel,
        out_shape=jax.ShapeDtypeStruct((D_OUT, B_pad), jnp.float32),
        grid_spec=pltpu.PrefetchScalarGridSpec(
            num_scalar_prefetch=0,
            grid=grid,
            in_specs=[
                pl.BlockSpec((D_IN, TB), lambda i: (0, i)),        # batch-tiled input (lane axis)
                pl.BlockSpec((P_ROWS, P_COLS), lambda i: (0, 0)),  # resident packed params
            ],
            out_specs=pl.BlockSpec((D_OUT, TB), lambda i: (0, i)),  # lane-dense output
        ),
        compiler_params=pltpu.CompilerParams(
            dimension_semantics=("parallel",),   # v7x: shard batch tiles across both TCs
            vmem_limit_bytes=32 * 1024 * 1024,   # covers MAX_TILE; within v7x 64 MiB physical
        ),
        cost_estimate=pl.CostEstimate(
            flops=2 * B_pad * (D_IN * D_HID + D_HID * D_OUT),
            transcendentals=B_pad * (D_HID + D_OUT),
            bytes_accessed=4 * (B_pad * (D_IN + D_OUT) + P_ROWS * P_COLS),
        ),
    )(xt, packed_params)

    return out_t.T[:B]                                # [B, 4] -- layout plumbing (16 B/row)


def init_params(key):
    # Deterministic init mirroring nn.Linear's default U(-1/sqrt(fan_in), 1/sqrt(fan_in)).
    k1, k2, k3, k4 = jax.random.split(key, 4)
    bound1 = 1.0 / jnp.sqrt(D_IN)
    bound2 = 1.0 / jnp.sqrt(D_HID)
    w1 = jax.random.uniform(k1, (D_IN, D_HID), jnp.float32, -bound1, bound1)   # [in, out]
    b1 = jax.random.uniform(k2, (D_HID,), jnp.float32, -bound1, bound1)
    w2 = jax.random.uniform(k3, (D_HID, D_OUT), jnp.float32, -bound2, bound2)  # [in, out]
    b2 = jax.random.uniform(k4, (D_OUT,), jnp.float32, -bound2, bound2)
    return w1, b1, w2, b2


def _reference(x, w1, b1, w2, b2):
    return jax.nn.sigmoid(jnp.tanh(x @ w1 + b1) @ w2 + b2)


if __name__ == "__main__":
    key = jax.random.PRNGKey(0)
    kx, kx2, kp = jax.random.split(key, 3)
    w1, b1, w2, b2 = init_params(kp)
    params = pack_params(w1, b1, w2, b2)   # packed ONCE, reused for every forward call

    # Small batch (single grid step, TB == 128 cover of B).
    B = 8
    x = jax.random.normal(kx, (B, D_IN), jnp.float32)
    out = jax.block_until_ready(simple_model_forward(x, params))
    ref = _reference(x, w1, b1, w2, b2)
    assert out.shape == (B, D_OUT)
    assert jnp.allclose(out, ref, atol=1e-5, rtol=1e-5)

    # Larger, non-divisible batch: exercises batch tiling (B=1000, TB=256 -> 4 grid
    # steps), resident params across steps, padding, and the transposed layout.
    B2 = 1000
    x2 = jax.random.normal(kx2, (B2, D_IN), jnp.float32)
    out2 = jax.block_until_ready(simple_model_forward(x2, params, block_b=256))
    ref2 = _reference(x2, w1, b1, w2, b2)
    assert out2.shape == (B2, D_OUT)
    assert jnp.allclose(out2, ref2, atol=1e-5, rtol=1e-5)

    print("KERNEL_OK")
</pallas_src>

<mosaic_0001>
module attributes {stable_mosaic.version = 11 : i64} {
  func.func @mlp_kernel(%arg0: i32, %arg1: memref<8x128xf32, #tpu.memory_space<vmem>>, %arg2: memref<24x128xf32, #tpu.memory_space<vmem>>, %arg3: memref<4x128xf32, #tpu.memory_space<vmem>>) attributes {dimension_semantics = [#tpu.dimension_semantics<parallel>], iteration_bounds = array<i64: 1>, scalar_prefetch = 0 : i64, scratch_operands = 0 : i64, tpu.core_type = #tpu.core_type<tc>, window_params = [{transform_indices = @transform_0, window_bounds = array<i64: 8, 128>}, {pipeline_mode = #tpu.pipeline_mode<synchronous>, transform_indices = @transform_1, window_bounds = array<i64: 24, 128>}, {transform_indices = @transform_2, window_bounds = array<i64: 4, 128>}]} {
    %c0 = arith.constant 0 : index
    %c0_0 = arith.constant 0 : index
    %0 = vector.load %arg1[%c0, %c0_0] : memref<8x128xf32, #tpu.memory_space<vmem>>, vector<8x128xf32>
    %c0_1 = arith.constant 0 : index
    %c0_2 = arith.constant 0 : index
    %1 = vector.load %arg2[%c0_1, %c0_2] : memref<24x128xf32, #tpu.memory_space<vmem>>, vector<15x8xf32>
    %c0_3 = arith.constant 0 : index
    %c8 = arith.constant 8 : index
    %2 = vector.load %arg2[%c0_3, %c8] : memref<24x128xf32, #tpu.memory_space<vmem>>, vector<15x1xf32>
    %c16 = arith.constant 16 : index
    %c0_4 = arith.constant 0 : index
    %3 = vector.load %arg2[%c16, %c0_4] : memref<24x128xf32, #tpu.memory_space<vmem>>, vector<4x15xf32>
    %c16_5 = arith.constant 16 : index
    %c15 = arith.constant 15 : index
    %4 = vector.load %arg2[%c16_5, %c15] : memref<24x128xf32, #tpu.memory_space<vmem>>, vector<4x1xf32>
    %cst = arith.constant dense<0.000000e+00> : vector<15x128xf32>
    %5 = tpu.matmul %1, %0, %cst {dimension_numbers = #tpu.dot_dimension_numbers<[1], [0], [0], [1], [0, 0, 1, 1], [], []>} : vector<15x8xf32>, vector<8x128xf32>, vector<15x128xf32> -> vector<15x128xf32>
    %6 = vector.broadcast %2 : vector<15x1xf32> to vector<15x128xf32>
    %7 = arith.addf %5, %6 : vector<15x128xf32>
    %8 = math.tanh %7 : vector<15x128xf32>
    %cst_6 = arith.constant dense<0.000000e+00> : vector<4x128xf32>
    %9 = tpu.matmul %3, %8, %cst_6 {dimension_numbers = #tpu.dot_dimension_numbers<[1], [0], [0], [1], [0, 0, 1, 1], [], []>} : vector<4x15xf32>, vector<15x128xf32>, vector<4x128xf32> -> vector<4x128xf32>
    %10 = vector.broadcast %4 : vector<4x1xf32> to vector<4x128xf32>
    %11 = arith.addf %9, %10 : vector<4x128xf32>
    %12 = arith.negf %11 : vector<4x128xf32>
    %13 = math.exp %12 : vector<4x128xf32>
    %cst_7 = arith.constant 1.000000e+00 : f32
    %14 = vector.broadcast %cst_7 : f32 to vector<4x128xf32>
    %15 = arith.addf %14, %13 : vector<4x128xf32>
    %16 = arith.divf %14, %15 : vector<4x128xf32>
    %c0_8 = arith.constant 0 : index
    %c0_9 = arith.constant 0 : index
    %17 = vector.load %arg3[%c0_8, %c0_9] : memref<4x128xf32, #tpu.memory_space<vmem>>, vector<4x128xf32>
    tpu.vector_store %arg3[%c0_8, %c0_9], %16 {strides = array<i32>} : memref<4x128xf32, #tpu.memory_space<vmem>>, vector<4x128xf32>,
    return
  }
  func.func @transform_0(%arg0: i32) -> (i32, i32) {
    %c0_i32 = arith.constant 0 : i32
    %c0_i32_0 = arith.constant 0 : i32
    return %c0_i32, %arg0 : i32, i32
  }
  func.func @transform_1(%arg0: i32) -> (i32, i32) {
    %c0_i32 = arith.constant 0 : i32
    %c0_i32_0 = arith.constant 0 : i32
    %c0_i32_1 = arith.constant 0 : i32
    return %c0_i32, %c0_i32_0 : i32, i32
  }
  func.func @transform_2(%arg0: i32) -> (i32, i32) {
    %c0_i32 = arith.constant 0 : i32
    %c0_i32_0 = arith.constant 0 : i32
    return %c0_i32, %arg0 : i32, i32
  }
}

</mosaic_0001>

<bundles_post_ra>
// kernel: simple_model_forward.1
= control target key start
LH: loop header
LB: loop body
LE: loop exit
PB: predicated region body
PF: predicated region fallthrough
CT: control target
= control target key end

     0   :  { %vm26_vm0 = vcmask 64512   ;;  %s203_s0 = inlined_call_operand.vmem [shape: f32[8,128], index: 0, kind: input, shape index: {}]   ;;  %s204_s1 = inlined_call_operand.vmem [shape: f32[24,128], index: 1, kind: input, shape index: {}]   ;;  %s205_s2 = inlined_call_operand.hbm [shape: f32[4,128], index: 2, kind: output, shape index: {}]  }
   0x1   :  { %v12_v0 = vld [vmem:[%s203_s0] sm:$0xff]  ;;  %v14_v2 = vld [vmem:[%s204_s1 + $0x8] sm:$0x7f] }
   0x2   :  { %v13_v1 = vld [vmem:[%s204_s1] sm:$0xff]  ;;  %46 = vmatpush.msra.mxu0 %v12_v0  ;;  %129 = vmatpush.msra.mxu2 %v12_v0 }
   0x3   :  { %7 = vsyncpa [#allocation3], 0  ;;  %124 = vmatmul.msk.f32.vlgmr.msra.gmra.mxu0 %vm26_vm0, %v13_v1  ;;  %125 = vmatmul.msk.f32.vlgmr.msra.gmra.mxu2 %vm26_vm0, %v14_v2  ;;  %v170_v3 = vmov 8   ;;  %v15_v4 = vld [vmem:[%s204_s1 + $0x10] sm:$0xf]  ;;  %v171_v5 = vmov 15  }
   0x4   :  { %133 = vset.pattern.permute.xlu0 %v170_v3  ;;  %134 = vset.pattern.permute.xlu1 %v171_v5  ;;  %vm64_vm1 = vcmask 1046528   ;;  %vm61_vm2 = vcmask 121856   ;;  %s172_s1 = smov [#allocation2]   ;;  %s115_s19 = sshll.u32 %s205_s2, 4  ;;  %s116_s19 = int_to_ptr.hbm [resolvable:$true] %s115_s19 }
   0x5   :  { %23 = vperm.xlu0 %133, %v14_v2   ;;  %58 = vperm.xlu1 %134, %v15_v4   ;;  %s113_s16 = sshll.u32 %s172_s1, 4  ;;  %s114_s16 = int_to_ptr.vmem [resolvable:$true] %s113_s16 }
   0xd   :  { %18 = vperm.xlu0 %133, %v13_v1  }
  0x15   :  { %135 = vset.pattern.permute.xlu0 %v171_v5 }
  0x77   :  { %v24_v6 = vpop.permute.xlu0 %23  ;;  %v59_v14 = vpop.permute.xlu1 %58 }
  0x7f   :  { %v19_v7 = vpop.permute.xlu0 %18 }
  0x80   :  { %v48_v8 = vpop.f32.mrf.mxu0 }
  0x81   :  { %v49_v10 = vadd.f32 %v48_v8, %v19_v7 }
  0x86   :  { %v51_v9 = vpop.f32.mrf.mxu2 }
  0x87   :  { %v52_v11 = vadd.f32 %v51_v9, %v24_v6 }
  0x89   :  { %136 = vtanh.f32 %v52_v11 }
  0x8a   :  { %138 = vtanh.f32 %v49_v10 }
  0x8f   :  { %v137_v12 = vpop.eup %136 }
  0x90   :  { %126 = vmatpush.msk.msra.mxu1 %vm64_vm1, %v137_v12  ;;  %v139_v13 = vpop.eup %138 }
  0x92   :  { %83 = vmatpush.msra.mxu1 %v139_v13 }
  0x93   :  { %127 = vmatmul.msk.f32.vlgmr.msra.gmra.mxu1 %vm61_vm2, %v15_v4 }
 0x110   :  { %v85_v15 = vpop.f32.mrf.mxu1 }
 0x111   :  { %v86_v16 = vadd.f32 %v85_v15, %v59_v14 }
 0x113   :  { %v128_v17 = vmul.f32 -1.442695, %v86_v16 }
 0x115   :  { %140 = vpow2.f32 %v128_v17 }
 0x11b   :  { %v141_v18 = vpop.eup %140 }
 0x11c   :  { %v91_v19 = vadd.f32 1.0, %v141_v18 }
 0x11e   :  { %142 = vrcp.f32 %v91_v19  ;;  %v103_v23 = vand.u32 2147483648, %v91_v19  ;;  %v101_v25 = vand.u32 2147483647, %v91_v19  ;;  %vm97_vm4 = vweird.f32 %v91_v19 }
 0x120   :  { %v104_v27 = vor.u32 1.1754944e-38, %v103_v23  ;;  %vm102_vm6 = vcmp.eq.f32.partialorder %v101_v25, 8.507059e+37 }
 0x124   :  { %v143_v20 = vpop.eup %142 }
 0x125   :  { %v93_v21 = vmul.f32 %v143_v20, %v91_v19  ;;  %vm98_vm3 = vweird.f32 %v143_v20 }
 0x126   :  { %vm99_vm5 = vmor %vm97_vm4, %vm98_vm3 }
 0x127   :  { %v94_v22 = vsub.f32 1.0, %v93_v21 }
 0x129   :  { %v95_v24 = vmul.f32 %v143_v20, %v94_v22 }
 0x12b   :  { %v96_v26 = vadd.f32 %v143_v20, %v95_v24 }
 0x12d   :  { %v100_v28 = vsel %vm99_vm5, %v143_v20, %v96_v26 }
 0x12e   :  { %v105_v29 = vsel %vm102_vm6, %v104_v27, %v100_v28 }
 0x12f   :  { %107 = vst [vmem:[#allocation2] sm:$0xf] %v105_v29 }
 0x130   :  { %118 = dma.vmem_to_hbm [thread:$0]  %s114_s16, 64, %s116_s19, [#allocation3]  }
 0x131   :  { %168 = dma.done.wait [#allocation3], 64  }
 0x132   :  { %169 = vsyncadd [#allocation3], 4294967232 }
 0x133   :  { %123 = vsyncpa [#allocation3], 1 }

</bundles_post_ra>
